<compile_context>
chip_gen: v7x
topology: tpu7x:2x2x1
jax: 0.10.0
libtpu: 0.0.40
codegen_flags: <defaults>
</compile_context>

<pallas_src>
import jax
import jax.numpy as jnp
from jax.experimental import pallas as pl
from jax.experimental.pallas import tpu as pltpu

IN_FEATURES = 3 * 28 * 28      # 2352
IN_PAD = 2432                  # 19 * 128
HIDDEN = 100
HID_PAD = 128
BOTTLENECK = 16
HEAD_OUT = 2 * BOTTLENECK      # fused mean|logvar = 32
TB_MAX = 512                   # batch-tile rows (multiple of 16 for bf16 sublanes)


def _round_up(x, m):
    return ((x + m - 1) // m) * m


def mlp_encoder_kernel(x_ref, w1_ref, w2_ref, wh_ref, b_ref, out_ref):
    # x_ref: (TB, IN_PAD) bf16 ; w*_ref bf16 ; b_ref/out_ref f32.
    x = x_ref[...]
    b = b_ref[...]                      # (3, HID_PAD) f32
    b1 = b[0:1, :]                      # (1, 128)
    b2 = b[1:2, :]                      # (1, 128)
    bh = b[2:3, :HEAD_OUT]              # (1, 32)

    h1 = jnp.dot(x, w1_ref[...], preferred_element_type=jnp.float32) + b1
    h1 = jnp.maximum(h1, 0.0).astype(jnp.bfloat16)          # ReLU

    h2 = jnp.dot(h1, w2_ref[...], preferred_element_type=jnp.float32) + b2
    h2 = jnp.maximum(h2, 0.0).astype(jnp.bfloat16)          # ReLU

    # Fused mean|logvar head: one lane-denser (TB, 32) store.
    out_ref[...] = jnp.dot(h2, wh_ref[...], preferred_element_type=jnp.float32) + bh


def pack_params(params):
    """One-time prep: pad to 128-multiples, fuse mean/logvar head, cast to bf16."""
    w1, b1, w2, b2, wm, bm, wl, bl = params

    w1_p = jnp.zeros((IN_PAD, HID_PAD), jnp.bfloat16)
    w1_p = w1_p.at[:IN_FEATURES, :HIDDEN].set(w1.astype(jnp.bfloat16))

    w2_p = jnp.zeros((HID_PAD, HID_PAD), jnp.bfloat16)
    w2_p = w2_p.at[:HIDDEN, :HIDDEN].set(w2.astype(jnp.bfloat16))

    wh = jnp.concatenate([wm, wl], axis=1)                  # (100, 32)
    wh_p = jnp.zeros((HID_PAD, HEAD_OUT), jnp.bfloat16)
    wh_p = wh_p.at[:HIDDEN, :].set(wh.astype(jnp.bfloat16))

    biases = jnp.zeros((3, HID_PAD), jnp.float32)
    biases = biases.at[0, :HIDDEN].set(b1.reshape(-1))
    biases = biases.at[1, :HIDDEN].set(b2.reshape(-1))
    biases = biases.at[2, :HEAD_OUT].set(
        jnp.concatenate([bm.reshape(-1), bl.reshape(-1)]))

    return w1_p, w2_p, wh_p, biases


def mlp_encoder_forward(x_nchw, packed_params):
    """x_nchw: (B, 3, 28, 28) f32.  Returns (mean, logvar), each (B, 16) f32."""
    w1_p, w2_p, wh_p, biases = packed_params
    B = x_nchw.shape[0]
    x_flat = x_nchw.reshape(B, -1)                          # same as torch x.view(B, -1)

    tb = min(TB_MAX, _round_up(max(B, 1), 16))              # batch tile (mult. of 16)
    b_pad = _round_up(B, tb)
    x_pad = jnp.zeros((b_pad, IN_PAD), jnp.bfloat16)
    x_pad = x_pad.at[:B, :IN_FEATURES].set(x_flat.astype(jnp.bfloat16))

    grid = (b_pad // tb,)
    out = pl.pallas_call(
        mlp_encoder_kernel,
        out_shape=jax.ShapeDtypeStruct((b_pad, HEAD_OUT), jnp.float32),
        grid=grid,
        in_specs=[
            pl.BlockSpec((tb, IN_PAD), lambda i: (i, 0)),          # x tile (pipelined)
            pl.BlockSpec((IN_PAD, HID_PAD), lambda i: (0, 0)),     # w1 (resident)
            pl.BlockSpec((HID_PAD, HID_PAD), lambda i: (0, 0)),    # w2 (resident)
            pl.BlockSpec((HID_PAD, HEAD_OUT), lambda i: (0, 0)),   # fused head weights
            pl.BlockSpec((3, HID_PAD), lambda i: (0, 0)),          # packed biases
        ],
        out_specs=pl.BlockSpec((tb, HEAD_OUT), lambda i: (i, 0)),
        compiler_params=pltpu.CompilerParams(
            dimension_semantics=("parallel",)),
    )(x_pad, w1_p, w2_p, wh_p, biases)

    mean = out[:B, :BOTTLENECK]
    logvar = out[:B, BOTTLENECK:]
    return mean, logvar


def init_params(key):
    """Deterministic synthetic parameters (shapes match the nn.Linear layers)."""
    ks = jax.random.split(key, 8)

    def lin(kw, kb, fan_in, fan_out):
        # uniform(-1/sqrt(fan_in), 1/sqrt(fan_in)) like torch's default init
        bound = 1.0 / jnp.sqrt(jnp.float32(fan_in))
        w = jax.random.uniform(kw, (fan_in, fan_out), jnp.float32, -bound, bound)
        b = jax.random.uniform(kb, (1, fan_out), jnp.float32, -bound, bound)
        return w, b

    w1, b1 = lin(ks[0], ks[1], IN_FEATURES, HIDDEN)
    w2, b2 = lin(ks[2], ks[3], HIDDEN, HIDDEN)
    wm, bm = lin(ks[4], ks[5], HIDDEN, BOTTLENECK)
    wl, bl = lin(ks[6], ks[7], HIDDEN, BOTTLENECK)
    return (w1, b1, w2, b2, wm, bm, wl, bl)


def reference_forward(x_nchw, params):
    """Pure-JAX f32 reference mirroring the PyTorch forward."""
    w1, b1, w2, b2, wm, bm, wl, bl = params
    x = x_nchw.reshape(x_nchw.shape[0], -1)
    h = jnp.maximum(x @ w1 + b1, 0.0)
    h = jnp.maximum(h @ w2 + b2, 0.0)
    return h @ wm + bm, h @ wl + bl


if __name__ == "__main__":
    key = jax.random.PRNGKey(0)
    k_x, k_p = jax.random.split(key)

    params = init_params(k_p)
    packed = pack_params(params)

    # Small demo batch (single grid step).
    B = 2
    x = jax.random.normal(k_x, (B, 3, 28, 28), dtype=jnp.float32)
    mean, logvar = mlp_encoder_forward(x, packed)
    jax.block_until_ready((mean, logvar))

    mean_ref, logvar_ref = reference_forward(x, params)
    assert mean.shape == (B, BOTTLENECK) and logvar.shape == (B, BOTTLENECK)
    # bf16 inputs/weights with f32 accumulation -> looser tolerance vs f32 reference.
    assert jnp.allclose(mean, mean_ref, atol=5e-2, rtol=5e-2)
    assert jnp.allclose(logvar, logvar_ref, atol=5e-2, rtol=5e-2)

    # Larger batch exercising the pipelined multi-step grid (3 tiles of 512).
    B2 = 1200
    x2 = jax.random.normal(jax.random.PRNGKey(1), (B2, 3, 28, 28), jnp.float32)
    mean2, logvar2 = mlp_encoder_forward(x2, packed)
    jax.block_until_ready((mean2, logvar2))
    mean2_ref, logvar2_ref = reference_forward(x2, params)
    assert mean2.shape == (B2, BOTTLENECK) and logvar2.shape == (B2, BOTTLENECK)
    assert jnp.allclose(mean2, mean2_ref, atol=1e-1, rtol=1e-1)
    assert jnp.allclose(logvar2, logvar2_ref, atol=1e-1, rtol=1e-1)

    print("KERNEL_OK")
</pallas_src>

<mosaic_0001>
module attributes {stable_mosaic.version = 11 : i64} {
  func.func @mlp_encoder_kernel(%arg0: i32, %arg1: memref<16x2432xbf16, #tpu.memory_space<vmem>>, %arg2: memref<2432x128xbf16, #tpu.memory_space<vmem>>, %arg3: memref<128x128xbf16, #tpu.memory_space<vmem>>, %arg4: memref<128x32xbf16, #tpu.memory_space<vmem>>, %arg5: memref<3x128xf32, #tpu.memory_space<vmem>>, %arg6: memref<16x32xf32, #tpu.memory_space<vmem>>) attributes {dimension_semantics = [#tpu.dimension_semantics<parallel>], iteration_bounds = array<i64: 1>, scalar_prefetch = 0 : i64, scratch_operands = 0 : i64, tpu.core_type = #tpu.core_type<tc>, window_params = [{transform_indices = @transform_0, window_bounds = array<i64: 16, 2432>}, {pipeline_mode = #tpu.pipeline_mode<synchronous>, transform_indices = @transform_1, window_bounds = array<i64: 2432, 128>}, {pipeline_mode = #tpu.pipeline_mode<synchronous>, transform_indices = @transform_2, window_bounds = array<i64: 128, 128>}, {pipeline_mode = #tpu.pipeline_mode<synchronous>, transform_indices = @transform_3, window_bounds = array<i64: 128, 32>}, {pipeline_mode = #tpu.pipeline_mode<synchronous>, transform_indices = @transform_4, window_bounds = array<i64: 3, 128>}, {transform_indices = @transform_5, window_bounds = array<i64: 16, 32>}]} {
    %c0 = arith.constant 0 : index
    %c0_0 = arith.constant 0 : index
    %0 = vector.load %arg1[%c0, %c0_0] : memref<16x2432xbf16, #tpu.memory_space<vmem>>, vector<16x2432xbf16>
    %c0_1 = arith.constant 0 : index
    %c0_2 = arith.constant 0 : index
    %1 = vector.load %arg5[%c0_1, %c0_2] : memref<3x128xf32, #tpu.memory_space<vmem>>, vector<3x128xf32>
    %2 = vector.extract_strided_slice %1 {offsets = [0, 0], sizes = [1, 128], strides = [1, 1]} : vector<3x128xf32> to vector<1x128xf32>
    %3 = vector.extract_strided_slice %1 {offsets = [1, 0], sizes = [1, 128], strides = [1, 1]} : vector<3x128xf32> to vector<1x128xf32>
    %4 = vector.extract_strided_slice %1 {offsets = [2, 0], sizes = [1, 32], strides = [1, 1]} : vector<3x128xf32> to vector<1x32xf32>
    %c0_3 = arith.constant 0 : index
    %c0_4 = arith.constant 0 : index
    %5 = vector.load %arg2[%c0_3, %c0_4] : memref<2432x128xbf16, #tpu.memory_space<vmem>>, vector<2432x128xbf16>
    %cst = arith.constant dense<0.000000e+00> : vector<16x128xf32>
    %6 = tpu.matmul %0, %5, %cst {dimension_numbers = #tpu.dot_dimension_numbers<[1], [0], [0], [1], [0, 0, 1, 1], [], []>} : vector<16x2432xbf16>, vector<2432x128xbf16>, vector<16x128xf32> -> vector<16x128xf32>
    %7 = vector.broadcast %2 : vector<1x128xf32> to vector<16x128xf32>
    %8 = arith.addf %6, %7 : vector<16x128xf32>
    %cst_5 = arith.constant 0.000000e+00 : f32
    %9 = vector.broadcast %cst_5 : f32 to vector<16x128xf32>
    %10 = arith.maximumf %8, %9 : vector<16x128xf32>
    %11 = arith.truncf %10 : vector<16x128xf32> to vector<16x128xbf16>
    %c0_6 = arith.constant 0 : index
    %c0_7 = arith.constant 0 : index
    %12 = vector.load %arg3[%c0_6, %c0_7] : memref<128x128xbf16, #tpu.memory_space<vmem>>, vector<128x128xbf16>
    %cst_8 = arith.constant dense<0.000000e+00> : vector<16x128xf32>
    %13 = tpu.matmul %11, %12, %cst_8 {dimension_numbers = #tpu.dot_dimension_numbers<[1], [0], [0], [1], [0, 0, 1, 1], [], []>} : vector<16x128xbf16>, vector<128x128xbf16>, vector<16x128xf32> -> vector<16x128xf32>
    %14 = vector.broadcast %3 : vector<1x128xf32> to vector<16x128xf32>
    %15 = arith.addf %13, %14 : vector<16x128xf32>
    %cst_9 = arith.constant 0.000000e+00 : f32
    %16 = vector.broadcast %cst_9 : f32 to vector<16x128xf32>
    %17 = arith.maximumf %15, %16 : vector<16x128xf32>
    %18 = arith.truncf %17 : vector<16x128xf32> to vector<16x128xbf16>
    %c0_10 = arith.constant 0 : index
    %c0_11 = arith.constant 0 : index
    %19 = vector.load %arg4[%c0_10, %c0_11] : memref<128x32xbf16, #tpu.memory_space<vmem>>, vector<128x32xbf16>
    %cst_12 = arith.constant dense<0.000000e+00> : vector<16x32xf32>
    %20 = tpu.matmul %18, %19, %cst_12 {dimension_numbers = #tpu.dot_dimension_numbers<[1], [0], [0], [1], [0, 0, 1, 1], [], []>} : vector<16x128xbf16>, vector<128x32xbf16>, vector<16x32xf32> -> vector<16x32xf32>
    %21 = vector.broadcast %4 : vector<1x32xf32> to vector<16x32xf32>
    %22 = arith.addf %20, %21 : vector<16x32xf32>
    %c0_13 = arith.constant 0 : index
    %c0_14 = arith.constant 0 : index
    %23 = vector.load %arg6[%c0_13, %c0_14] : memref<16x32xf32, #tpu.memory_space<vmem>>, vector<16x32xf32>
    tpu.vector_store %arg6[%c0_13, %c0_14], %22 {strides = array<i32>} : memref<16x32xf32, #tpu.memory_space<vmem>>, vector<16x32xf32>,
    return
  }
  func.func @transform_0(%arg0: i32) -> (i32, i32) {
    %c0_i32 = arith.constant 0 : i32
    %c0_i32_0 = arith.constant 0 : i32
    return %arg0, %c0_i32 : i32, i32
  }
  func.func @transform_1(%arg0: i32) -> (i32, i32) {
    %c0_i32 = arith.constant 0 : i32
    %c0_i32_0 = arith.constant 0 : i32
    %c0_i32_1 = arith.constant 0 : i32
    return %c0_i32, %c0_i32_0 : i32, i32
  }
  func.func @transform_2(%arg0: i32) -> (i32, i32) {
    %c0_i32 = arith.constant 0 : i32
    %c0_i32_0 = arith.constant 0 : i32
    %c0_i32_1 = arith.constant 0 : i32
    return %c0_i32, %c0_i32_0 : i32, i32
  }
  func.func @transform_3(%arg0: i32) -> (i32, i32) {
    %c0_i32 = arith.constant 0 : i32
    %c0_i32_0 = arith.constant 0 : i32
    %c0_i32_1 = arith.constant 0 : i32
    return %c0_i32, %c0_i32_0 : i32, i32
  }
  func.func @transform_4(%arg0: i32) -> (i32, i32) {
    %c0_i32 = arith.constant 0 : i32
    %c0_i32_0 = arith.constant 0 : i32
    %c0_i32_1 = arith.constant 0 : i32
    return %c0_i32, %c0_i32_0 : i32, i32
  }
  func.func @transform_5(%arg0: i32) -> (i32, i32) {
    %c0_i32 = arith.constant 0 : i32
    %c0_i32_0 = arith.constant 0 : i32
    return %arg0, %c0_i32 : i32, i32
  }
}

</mosaic_0001>

<bundles_post_ra>
// kernel: tpu_custom_call.1
= control target key start
LH: loop header
LB: loop body
LE: loop exit
PB: predicated region body
PF: predicated region fallthrough
CT: control target
= control target key end

     0   :  { %10 = vsyncpa [#allocation3], 0  ;;  %s2961_s0 = inlined_call_operand.hbm [shape: bf16[16,2432], index: 0, kind: input, shape index: {}]   ;;  %s2962_s1 = inlined_call_operand.hbm [shape: bf16[2432,128], index: 1, kind: input, shape index: {}]   ;;  %s2963_s2 = inlined_call_operand.vmem [shape: bf16[128,128], index: 2, kind: input, shape index: {}]   ;;  %s2964_s3 = inlined_call_operand.vmem [shape: bf16[128,32], index: 3, kind: input, shape index: {}]   ;;  %s2965_s4 = inlined_call_operand.vmem [shape: f32[3,128], index: 4, kind: input, shape index: {}]   ;;  %s2966_s5 = inlined_call_operand.hbm [shape: f32[16,32], index: 5, kind: output, shape index: {}]  }
   0x1   :  { %11 = vsyncpa [#allocation6], 0 }
   0x2   :  { %12 = vsyncpa [#allocation4], 0  ;;  %s2793_s18 = smov [#allocation2]   ;;  %s2721_s22 = scalar_lea.hbm %s2961_s0, 2432 }
   0x3   :  { %s18_s19 = sshll.u32 %s2793_s18, 4  ;;  %p2722_p0 = scmp.ne.s32.totalorder %s2961_s0, %s2721_s22  ;;  %s19_s19 = int_to_ptr.vmem [resolvable:$true] %s18_s19 }
   0x4   :  { %p2725_p1 = scmp.lt.u32.totalorder %s2721_s22, %s2961_s0 }
   0x6   :  { %p2727_p2 = pnand %p2725_p1, %p2722_p0 }
   0x8   :  { %2730 = shalt.err (!%p2727_p2)
}
   0x9   :  { %s2731_s27 = scalar_lea.vmem %s19_s19, 2432  ;;  %p2736_p4 = scmp.lt.s32.totalorder %s19_s19, %s19_s19 }
   0xa   :  { %p2732_p3 = scmp.ne.s32.totalorder %s19_s19, %s2731_s27  ;;  %p2737_p5 = scmp.lt.s32.totalorder %s2731_s27, %s2731_s27 }
   0xc   :  { %p2738_p6 = por %p2737_p5, %p2736_p4 }
   0xe   :  { %p2739_p7 = pnand %p2738_p6, %p2732_p3 }
  0x10   :  { %2742 = shalt.err (!%p2739_p7)
}
  0x11   :  { %s2794_s28 = smov 1216   ;;  %s2795_s29 = smov 76  }
  0x12   :  { %24 = dma.hbm_to_vmem [thread:$0]  %s2961_s0, 2432, %s19_s19, [#allocation3], %s2794_s28, %s2794_s28, %s2795_s29  }
  0x13   :  { %s2796_s7 = smov [#allocation5]   ;;  %s2743_s11 = scalar_lea.hbm %s2962_s1, 19456 }
  0x14   :  { %s30_s8 = sshll.u32 %s2796_s7, 4  ;;  %p2744_p8 = scmp.ne.s32.totalorder %s2962_s1, %s2743_s11  ;;  %s31_s8 = int_to_ptr.vmem [resolvable:$true] %s30_s8 }
  0x15   :  { %p2747_p9 = scmp.lt.u32.totalorder %s2743_s11, %s2962_s1 }
  0x17   :  { %p2749_p10 = pnand %p2747_p9, %p2744_p8 }
  0x19   :  { %2752 = shalt.err (!%p2749_p10)
}
  0x1a   :  { %s2753_s16 = scalar_lea.vmem %s31_s8, 19456  ;;  %p2758_p12 = scmp.lt.s32.totalorder %s31_s8, %s31_s8 }
  0x1b   :  { %p2754_p11 = scmp.ne.s32.totalorder %s31_s8, %s2753_s16  ;;  %p2759_p13 = scmp.lt.s32.totalorder %s2753_s16, %s2753_s16 }
  0x1d   :  { %p2760_p0 = por %p2759_p13, %p2758_p12 }
  0x1f   :  { %p2761_p1 = pnand %p2760_p0, %p2754_p11 }
  0x21   :  { %2764 = shalt.err (!%p2761_p1)
}
  0x22   :  { %s2797_s0 = smov 64   ;;  %s2798_s17 = smov 4  }
  0x23   :  { %36 = dma.hbm_to_vmem [thread:$0]  %s2962_s1, 19456, %s31_s8, [#allocation6], %s2797_s0, %s2797_s0, %s2798_s17  }
  0x24   :  { %2787 = dma.done.wait [#allocation3], 2432  }
  0x25   :  { %2788 = vsyncadd [#allocation3], 4294964864 }
  0x26   :  { %2789 = dma.done.wait [#allocation6], 19456  }
  0x27   :  { %2790 = vsyncadd [#allocation6], 4294947840  ;;  %v2525_v0 = vld [vmem:[#allocation5 + $0x40] sm:$0xff]   ;;  %v2529_v4 = vld [vmem:[#allocation5 + $0x48] sm:$0xff]   ;;  %vm2800_vm0 = vmmov 0   ;;  %vm2021_vm1 = vcmask 261120  }
  0x28   :  { %v2526_v1 = vld [vmem:[#allocation5] sm:$0xff]   ;;  %2229 = vmatprep.subr.bf16.mxu0 %v2525_v0  ;;  %v2530_v5 = vld [vmem:[#allocation5 + $0x8] sm:$0xff]   ;;  %v2533_v8 = vld [vmem:[#allocation5 + $0x50] sm:$0xff]  }
  0x29   :  { %v2527_v2 = vld [vmem:[#allocation5 + $0xc0] sm:$0xff]   ;;  %2230 = vmatpush3.bf16.msra.mxu0 %v2526_v1  ;;  %v2531_v6 = vld [vmem:[#allocation5 + $0xc8] sm:$0xff]   ;;  %v2534_v9 = vld [vmem:[#allocation5 + $0x10] sm:$0xff]  }
  0x2a   :  { %v2528_v3 = vld [vmem:[#allocation5 + $0x80] sm:$0xff]   ;;  %2251 = vmatprep.subr.bf16.mxu1 %v2527_v2  ;;  %2231 = vmatprep.subr.bf16.mxu0 %v2529_v4  ;;  %v2532_v7 = vld [vmem:[#allocation5 + $0x88] sm:$0xff]   ;;  %v2535_v10 = vld [vmem:[#allocation5 + $0xd0] sm:$0xff]  }
  0x2b   :  { %2252 = vmatpush3.bf16.msra.mxu1 %v2528_v3  ;;  %v2536_v11 = vld [vmem:[#allocation5 + $0x90] sm:$0xff]   ;;  %v2537_v12 = vld [vmem:[#allocation5 + $0x58] sm:$0xff]   ;;  %v2541_v16 = vld [vmem:[#allocation5 + $0x60] sm:$0xff]  }
  0x2c   :  { %2253 = vmatprep.subr.bf16.mxu1 %v2531_v6  ;;  %v2538_v13 = vld [vmem:[#allocation5 + $0x18] sm:$0xff]   ;;  %v2542_v17 = vld [vmem:[#allocation5 + $0x20] sm:$0xff]   ;;  %v2545_v20 = vld [vmem:[#allocation5 + $0x68] sm:$0xff]  }
  0x2d   :  { %2232 = vmatpush3.bf16.msra.mxu0 %v2530_v5  ;;  %v2539_v14 = vld [vmem:[#allocation5 + $0xd8] sm:$0xff]   ;;  %v2543_v18 = vld [vmem:[#allocation5 + $0xe0] sm:$0xff]   ;;  %v2546_v21 = vld [vmem:[#allocation5 + $0x28] sm:$0xff]  }
  0x2e   :  { %2233 = vmatprep.subr.bf16.mxu0 %v2533_v8  ;;  %v2540_v15 = vld [vmem:[#allocation5 + $0x98] sm:$0xff]   ;;  %v2544_v19 = vld [vmem:[#allocation5 + $0xa0] sm:$0xff]   ;;  %v2547_v22 = vld [vmem:[#allocation5 + $0xe8] sm:$0xff]  }
  0x2f   :  { %2254 = vmatpush3.bf16.msra.mxu1 %v2532_v7  ;;  %v2548_v23 = vld [vmem:[#allocation5 + $0xa8] sm:$0xff]   ;;  %v2549_v24 = vld [vmem:[#allocation5 + $0x70] sm:$0xff]   ;;  %v2553_v28 = vld [vmem:[#allocation5 + $0x78] sm:$0xff]  }
  0x30   :  { %2255 = vmatprep.subr.bf16.mxu1 %v2535_v10  ;;  %v2550_v25 = vld [vmem:[#allocation5 + $0x30] sm:$0xff]   ;;  %v2554_v29 = vld [vmem:[#allocation5 + $0x38] sm:$0xff]   ;;  %v2560_v34 = vld [vmem:[#allocation5 + $0x140] sm:$0xff]  }
  0x31   :  { %2234 = vmatpush3.bf16.msra.mxu0 %v2534_v9  ;;  %v2551_v26 = vld [vmem:[#allocation5 + $0xf0] sm:$0xff]   ;;  %v2555_v30 = vld [vmem:[#allocation5 + $0xf8] sm:$0xff]   ;;  %v2564_v37 = vld [vmem:[#allocation5 + $0x100] sm:$0xff]  }
  0x32   :  { %2235 = vmatprep.subr.bf16.mxu0 %v2537_v12  ;;  %v2552_v27 = vld [vmem:[#allocation5 + $0xb0] sm:$0xff]   ;;  %v2558_v32 = vld [vmem:[#allocation2 + $0x4] ss:$76 sps:$4 sm:$0xff]   ;;  %v2565_v38 = vld [vmem:[#allocation5 + $0x1c0] sm:$0xff]  }
  0x33   :  { %2256 = vmatpush3.bf16.msra.mxu1 %v2536_v11  ;;  %v2556_v31 = vld [vmem:[#allocation2] ss:$76 sps:$4 sm:$0xff]   ;;  %v2559_v33 = vld [vmem:[#allocation5 + $0xb8] sm:$0xff]   ;;  %1419 = vmatprep.mubr.bf16.mxu0 %v2558_v32  ;;  %v2566_v39 = vld [vmem:[#allocation5 + $0x180] sm:$0xff]  }
  0x34   :  { %2257 = vmatprep.subr.bf16.mxu1 %v2539_v14  ;;  %v2561_v35 = vld [vmem:[#allocation2 + $0x8] ss:$76 sps:$4 sm:$0xff]   ;;  %v2563_v36 = vld [vmem:[#allocation2 + $0xc] ss:$76 sps:$4 sm:$0xff]   ;;  %v2567_v40 = vld [vmem:[#allocation5 + $0x148] sm:$0xff]  }
  0x35   :  { %2236 = vmatpush3.bf16.msra.mxu0 %v2538_v13  ;;  %1460 = vmatprep.mubr.bf16.mxu1 %v2563_v36  ;;  %v2568_v41 = vld [vmem:[#allocation5 + $0x108] sm:$0xff]   ;;  %v2571_v44 = vld [vmem:[#allocation5 + $0x150] sm:$0xff]   ;;  %v2575_v48 = vld [vmem:[#allocation5 + $0x158] sm:$0xff]  }
  0x36   :  { %2237 = vmatprep.subr.bf16.mxu0 %v2541_v16  ;;  %v2569_v42 = vld [vmem:[#allocation5 + $0x1c8] sm:$0xff]   ;;  %v2572_v45 = vld [vmem:[#allocation5 + $0x110] sm:$0xff]   ;;  %v2576_v49 = vld [vmem:[#allocation5 + $0x118] sm:$0xff]  }
  0x37   :  { %2258 = vmatpush3.bf16.msra.mxu1 %v2540_v15  ;;  %v2570_v43 = vld [vmem:[#allocation5 + $0x188] sm:$0xff]   ;;  %v2573_v46 = vld [vmem:[#allocation5 + $0x1d0] sm:$0xff]   ;;  %v2577_v50 = vld [vmem:[#allocation5 + $0x1d8] sm:$0xff]  }
  0x38   :  { %2259 = vmatprep.subr.bf16.mxu1 %v2543_v18  ;;  %v2574_v47 = vld [vmem:[#allocation5 + $0x190] sm:$0xff]   ;;  %v2578_v51 = vld [vmem:[#allocation5 + $0x198] sm:$0xff]   ;;  %v2579_v52 = vld [vmem:[#allocation5 + $0x160] sm:$0xff]  }
  0x39   :  { %2238 = vmatpush3.bf16.msra.mxu0 %v2542_v17  ;;  %v2580_v53 = vld [vmem:[#allocation5 + $0x120] sm:$0xff]   ;;  %v2583_v56 = vld [vmem:[#allocation5 + $0x168] sm:$0xff]   ;;  %v2587_v60 = vld [vmem:[#allocation5 + $0x170] sm:$0xff]  }
  0x3a   :  { %2239 = vmatprep.subr.bf16.mxu0 %v2545_v20  ;;  %v2581_v54 = vld [vmem:[#allocation5 + $0x1e0] sm:$0xff]   ;;  %v2584_v57 = vld [vmem:[#allocation5 + $0x128] sm:$0xff]   ;;  %v2588_v61 = vld [vmem:[#allocation5 + $0x130] sm:$0xff]  }
  0x3b   :  { %2260 = vmatpush3.bf16.msra.mxu1 %v2544_v19  ;;  %v2582_v55 = vld [vmem:[#allocation5 + $0x1a0] sm:$0xff]   ;;  %v2585_v58 = vld [vmem:[#allocation5 + $0x1e8] sm:$0xff]   ;;  %v2589_v62 = vld [vmem:[#allocation5 + $0x1f0] sm:$0xff]  }
  0x3c   :  { %2261 = vmatprep.subr.bf16.mxu1 %v2547_v22  ;;  %v2586_v59 = vld [vmem:[#allocation5 + $0x1a8] sm:$0xff]   ;;  %v2590_v63 = vld [vmem:[#allocation5 + $0x1b0] sm:$0xff]   ;;  %v2591_v0 = vld [vmem:[#allocation5 + $0x178] sm:$0xff]  }
  0x3d   :  { %2240 = vmatpush3.bf16.msra.mxu0 %v2546_v21  ;;  %v2592_v1 = vld [vmem:[#allocation5 + $0x138] sm:$0xff]   ;;  %v2598_v6 = vld [vmem:[#allocation5 + $0x240] sm:$0xff]   ;;  %v2605_v12 = vld [vmem:[#allocation5 + $0x248] sm:$0xff]  }
  0x3e   :  { %2241 = vmatprep.subr.bf16.mxu0 %v2549_v24  ;;  %v2593_v2 = vld [vmem:[#allocation5 + $0x1f8] sm:$0xff]   ;;  %v2599_v7 = vld [vmem:[#allocation2 + $0x18] ss:$76 sps:$4 sm:$0xff]   ;;  %v2601_v8 = vld [vmem:[#allocation2 + $0x1c] ss:$76 sps:$4 sm:$0xff]  }
  0x3f   :  { %2262 = vmatpush3.bf16.msra.mxu1 %v2548_v23  ;;  %v2594_v3 = vld [vmem:[#allocation2 + $0x10] ss:$76 sps:$4 sm:$0xff]   ;;  %v2596_v4 = vld [vmem:[#allocation2 + $0x14] ss:$76 sps:$4 sm:$0xff]   ;;  %v2609_v16 = vld [vmem:[#allocation5 + $0x250] sm:$0xff]  }
  0x40   :  { %2263 = vmatprep.subr.bf16.mxu1 %v2551_v26  ;;  %v2597_v5 = vld [vmem:[#allocation5 + $0x1b8] sm:$0xff]   ;;  %v2602_v9 = vld [vmem:[#allocation5 + $0x200] sm:$0xff]   ;;  %v2606_v13 = vld [vmem:[#allocation5 + $0x208] sm:$0xff]  }
  0x41   :  { %2242 = vmatpush3.bf16.msra.mxu0 %v2550_v25  ;;  %v2603_v10 = vld [vmem:[#allocation5 + $0x2c0] sm:$0xff]   ;;  %v2607_v14 = vld [vmem:[#allocation5 + $0x2c8] sm:$0xff]   ;;  %v2610_v17 = vld [vmem:[#allocation5 + $0x210] sm:$0xff]  }
  0x42   :  { %2243 = vmatprep.subr.bf16.mxu0 %v2553_v28  ;;  %v2604_v11 = vld [vmem:[#allocation5 + $0x280] sm:$0xff]   ;;  %v2608_v15 = vld [vmem:[#allocation5 + $0x288] sm:$0xff]   ;;  %v2611_v18 = vld [vmem:[#allocation5 + $0x2d0] sm:$0xff]  }
  0x43   :  { %2264 = vmatpush3.bf16.msra.mxu1 %v2552_v27  ;;  %v2612_v19 = vld [vmem:[#allocation5 + $0x290] sm:$0xff]   ;;  %v2613_v20 = vld [vmem:[#allocation5 + $0x258] sm:$0xff]   ;;  %v2617_v24 = vld [vmem:[#allocation5 + $0x260] sm:$0xff]  }
  0x44   :  { %2265 = vmatprep.subr.bf16.mxu1 %v2555_v30  ;;  %v2614_v21 = vld [vmem:[#allocation5 + $0x218] sm:$0xff]   ;;  %v2618_v25 = vld [vmem:[#allocation5 + $0x220] sm:$0xff]   ;;  %v2621_v28 = vld [vmem:[#allocation5 + $0x268] sm:$0xff]  }
  0x45   :  { %2244 = vmatpush3.bf16.msra.mxu0 %v2554_v29  ;;  %v2615_v22 = vld [vmem:[#allocation5 + $0x2d8] sm:$0xff]   ;;  %v2619_v26 = vld [vmem:[#allocation5 + $0x2e0] sm:$0xff]   ;;  %v2622_v29 = vld [vmem:[#allocation5 + $0x228] sm:$0xff]  }
  0x46   :  { %2273 = vmatprep.subr.bf16.mxu0 %v2560_v34  ;;  %v2616_v23 = vld [vmem:[#allocation5 + $0x298] sm:$0xff]   ;;  %v2620_v27 = vld [vmem:[#allocation5 + $0x2a0] sm:$0xff]   ;;  %v2623_v30 = vld [vmem:[#allocation5 + $0x2e8] sm:$0xff]  }
  0x47   :  { %2266 = vmatpush3.bf16.msra.mxu1 %v2559_v33  ;;  %v2625_v32 = vld [vmem:[#allocation5 + $0x270] sm:$0xff]   ;;  %v2629_v36 = vld [vmem:[#allocation5 + $0x278] sm:$0xff]  }
  0x48   :  { %1420 = vmatmul.mubr.bf16.vlgmr.msra.gmra.mrb[0].mxu0 %v2556_v31  ;;  %2295 = vmatprep.subr.bf16.mxu1 %v2565_v38  ;;  %v2624_v31 = vld [vmem:[#allocation5 + $0x2a8] sm:$0xff]   ;;  %v2626_v33 = vld [vmem:[#allocation5 + $0x230] sm:$0xff]   ;;  %v2631_v38 = vld [vmem:[#allocation5 + $0x2f8] sm:$0xff]  }
  0x49   :  { %2274 = vmatpush3.bf16.msra.mxu0 %v2564_v37  ;;  %1501 = vmatprep.mubr.bf16.mxu0 %v2596_v4  ;;  %v2627_v34 = vld [vmem:[#allocation5 + $0x2f0] sm:$0xff]   ;;  %v2630_v37 = vld [vmem:[#allocation5 + $0x238] sm:$0xff]  }
  0x4a   :  { %1461 = vmatmul.mubr.bf16.vlgmr.msra.gmra.mrb[0].mxu1 %v2561_v35  ;;  %2275 = vmatprep.subr.bf16.mxu0 %v2567_v40  ;;  %v2628_v35 = vld [vmem:[#allocation5 + $0x2b0] sm:$0xff]   ;;  %v2634_v40 = vld [vmem:[#allocation2 + $0x24] ss:$76 sps:$4 sm:$0xff]  }
  0x4b   :  { %2296 = vmatpush3.bf16.msra.mxu1 %v2566_v39  ;;  %1542 = vmatprep.mubr.bf16.mxu1 %v2601_v8  ;;  %v2632_v39 = vld [vmem:[#allocation2 + $0x20] ss:$76 sps:$4 sm:$0xff]   ;;  %v2667_v8 = vld [vmem:[#allocation5 + $0x378] sm:$0xff]  }
  0x4c   :  { %2297 = vmatprep.subr.bf16.mxu1 %v2569_v42  ;;  %v2636_v42 = vld [vmem:[#allocation5 + $0x340] sm:$0xff]   ;;  %v2663_v4 = vld [vmem:[#allocation5 + $0x370] sm:$0xff]  }
  0x4d   :  { %2276 = vmatpush3.bf16.msra.mxu0 %v2568_v41  ;;  %v2635_v41 = vld [vmem:[#allocation5 + $0x2b8] sm:$0xff]  }
  0x4e   :  { %2277 = vmatprep.subr.bf16.mxu0 %v2571_v44  ;;  %v2639_v44 = vld [vmem:[#allocation2 + $0x2c] ss:$76 sps:$4 sm:$0xff]  }
  0x4f   :  { %2298 = vmatpush3.bf16.msra.mxu1 %v2570_v43  ;;  %v2637_v43 = vld [vmem:[#allocation2 + $0x28] ss:$76 sps:$4 sm:$0xff]  }
  0x50   :  { %2299 = vmatprep.subr.bf16.mxu1 %v2573_v46  ;;  %v2641_v46 = vld [vmem:[#allocation5 + $0x3c0] sm:$0xff]  }
  0x51   :  { %2278 = vmatpush3.bf16.msra.mxu0 %v2572_v45  ;;  %v2640_v45 = vld [vmem:[#allocation5 + $0x300] sm:$0xff]  }
  0x52   :  { %2279 = vmatprep.subr.bf16.mxu0 %v2575_v48  ;;  %v2643_v48 = vld [vmem:[#allocation5 + $0x348] sm:$0xff]  }
  0x53   :  { %2300 = vmatpush3.bf16.msra.mxu1 %v2574_v47  ;;  %v2642_v47 = vld [vmem:[#allocation5 + $0x380] sm:$0xff]  }
  0x54   :  { %2301 = vmatprep.subr.bf16.mxu1 %v2577_v50  ;;  %v2645_v50 = vld [vmem:[#allocation5 + $0x3c8] sm:$0xff]  }
  0x55   :  { %2280 = vmatpush3.bf16.msra.mxu0 %v2576_v49  ;;  %v2644_v49 = vld [vmem:[#allocation5 + $0x308] sm:$0xff]  }
  0x56   :  { %2281 = vmatprep.subr.bf16.mxu0 %v2579_v52  ;;  %v2647_v52 = vld [vmem:[#allocation5 + $0x350] sm:$0xff]  }
  0x57   :  { %2302 = vmatpush3.bf16.msra.mxu1 %v2578_v51  ;;  %v2646_v51 = vld [vmem:[#allocation5 + $0x388] sm:$0xff]  }
  0x58   :  { %2303 = vmatprep.subr.bf16.mxu1 %v2581_v54  ;;  %v2649_v54 = vld [vmem:[#allocation5 + $0x3d0] sm:$0xff]  }
  0x59   :  { %2282 = vmatpush3.bf16.msra.mxu0 %v2580_v53  ;;  %v2648_v53 = vld [vmem:[#allocation5 + $0x310] sm:$0xff]  }
  0x5a   :  { %2283 = vmatprep.subr.bf16.mxu0 %v2583_v56  ;;  %v2651_v56 = vld [vmem:[#allocation5 + $0x358] sm:$0xff]  }
  0x5b   :  { %2304 = vmatpush3.bf16.msra.mxu1 %v2582_v55  ;;  %v2650_v55 = vld [vmem:[#allocation5 + $0x390] sm:$0xff]  }
  0x5c   :  { %2305 = vmatprep.subr.bf16.mxu1 %v2585_v58  ;;  %v2653_v58 = vld [vmem:[#allocation5 + $0x3d8] sm:$0xff]  }
  0x5d   :  { %2284 = vmatpush3.bf16.msra.mxu0 %v2584_v57  ;;  %v2652_v57 = vld [vmem:[#allocation5 + $0x318] sm:$0xff]  }
  0x5e   :  { %2285 = vmatprep.subr.bf16.mxu0 %v2587_v60  ;;  %v2655_v60 = vld [vmem:[#allocation5 + $0x360] sm:$0xff]  }
  0x5f   :  { %2306 = vmatpush3.bf16.msra.mxu1 %v2586_v59  ;;  %v2654_v59 = vld [vmem:[#allocation5 + $0x398] sm:$0xff]  }
  0x60   :  { %2307 = vmatprep.subr.bf16.mxu1 %v2589_v62  ;;  %v2657_v62 = vld [vmem:[#allocation5 + $0x3e0] sm:$0xff]  }
  0x61   :  { %2286 = vmatpush3.bf16.msra.mxu0 %v2588_v61  ;;  %v2656_v61 = vld [vmem:[#allocation5 + $0x320] sm:$0xff]  }
  0x62   :  { %2287 = vmatprep.subr.bf16.mxu0 %v2591_v0  ;;  %v2659_v0 = vld [vmem:[#allocation5 + $0x368] sm:$0xff]  }
  0x63   :  { %2308 = vmatpush3.bf16.msra.mxu1 %v2590_v63  ;;  %v2658_v63 = vld [vmem:[#allocation5 + $0x3a0] sm:$0xff]  }
  0x64   :  { %2309 = vmatprep.subr.bf16.mxu1 %v2593_v2  ;;  %v2661_v2 = vld [vmem:[#allocation5 + $0x3e8] sm:$0xff]  }
  0x65   :  { %2288 = vmatpush3.bf16.msra.mxu0 %v2592_v1  ;;  %v2660_v1 = vld [vmem:[#allocation5 + $0x328] sm:$0xff]  }
  0x66   :  { %2317 = vmatprep.subr.bf16.mxu0 %v2598_v6  ;;  %v2665_v6 = vld [vmem:[#allocation5 + $0x3f0] sm:$0xff]  }
  0x67   :  { %2310 = vmatpush3.bf16.msra.mxu1 %v2597_v5  ;;  %v2664_v5 = vld [vmem:[#allocation5 + $0x330] sm:$0xff]  }
  0x68   :  { %1502 = vmatmul.mubr.bf16.vlgmr.msra.gmra.mrb[4].mxu0 %v2594_v3  ;;  %2339 = vmatprep.subr.bf16.mxu1 %v2603_v10  ;;  %v2662_v3 = vld [vmem:[#allocation5 + $0x3a8] sm:$0xff]   ;;  %v2669_v10 = vld [vmem:[#allocation5 + $0x3f8] sm:$0xff]  }
  0x69   :  { %2318 = vmatpush3.bf16.msra.mxu0 %v2602_v9  ;;  %1583 = vmatprep.mubr.bf16.mxu0 %v2634_v40  ;;  %v2668_v9 = vld [vmem:[#allocation5 + $0x338] sm:$0xff]  }
  0x6a   :  { %1543 = vmatmul.mubr.bf16.vlgmr.msra.gmra.mrb[4].mxu1 %v2599_v7  ;;  %2319 = vmatprep.subr.bf16.mxu0 %v2605_v12  ;;  %v2666_v7 = vld [vmem:[#allocation5 + $0x3b0] sm:$0xff]   ;;  %v2672_v12 = vld [vmem:[#allocation2 + $0x34] ss:$76 sps:$4 sm:$0xff]  }
  0x6b   :  { %2340 = vmatpush3.bf16.msra.mxu1 %v2604_v11  ;;  %1624 = vmatprep.mubr.bf16.mxu1 %v2639_v44  ;;  %v2670_v11 = vld [vmem:[#allocation2 + $0x30] ss:$76 sps:$4 sm:$0xff]   ;;  %v2705_v44 = vld [vmem:[%s2963_s2] sm:$0xff]  }
  0x6c   :  { %2341 = vmatprep.subr.bf16.mxu1 %v2607_v14  ;;  %v2674_v14 = vld [vmem:[#allocation5 + $0x440] sm:$0xff]   ;;  %v2699_v40 = vld [vmem:[#allocation5 + $0x438] sm:$0xff]  }
  0x6d   :  { %2320 = vmatpush3.bf16.msra.mxu0 %v2606_v13  ;;  %v2673_v13 = vld [vmem:[#allocation5 + $0x3b8] sm:$0xff]  }
  0x6e   :  { %2321 = vmatprep.subr.bf16.mxu0 %v2609_v16  ;;  %v2677_v16 = vld [vmem:[#allocation2 + $0x3c] ss:$76 sps:$4 sm:$0xff]  }
  0x6f   :  { %2342 = vmatpush3.bf16.msra.mxu1 %v2608_v15  ;;  %v2675_v15 = vld [vmem:[#allocation2 + $0x38] ss:$76 sps:$4 sm:$0xff]  }
  0x70   :  { %2343 = vmatprep.subr.bf16.mxu1 %v2611_v18  ;;  %v2799_v18 = vmov 0.0  }
  0x71   :  { %2322 = vmatpush3.bf16.msra.mxu0 %v2610_v17  ;;  %v2678_v17 = vld [vmem:[#allocation5 + $0x400] sm:$0xff]  }
  0x72   :  { %2323 = vmatprep.subr.bf16.mxu0 %v2613_v20  ;;  %v2680_v20 = vld [vmem:[#allocation5 + $0x448] sm:$0xff]  }
  0x73   :  { %2344 = vmatpush3.bf16.msra.mxu1 %v2612_v19  ;;  %v2679_v19 = vld [vmem:[#allocation5 + $0x480] sm:$0xff]  }
  0x74   :  { %2345 = vmatprep.subr.bf16.mxu1 %v2615_v22  ;;  %v2682_v22 = vld [vmem:[#allocation5 + $0x488] sm:$0xff]  }
  0x75   :  { %2324 = vmatpush3.bf16.msra.mxu0 %v2614_v21  ;;  %v2681_v21 = vld [vmem:[#allocation5 + $0x408] sm:$0xff]  }
  0x76   :  { %2325 = vmatprep.subr.bf16.mxu0 %v2617_v24  ;;  %v2684_v24 = vld [vmem:[#allocation5 + $0x410] sm:$0xff]  }
  0x77   :  { %2346 = vmatpush3.bf16.msra.mxu1 %v2616_v23  ;;  %v2683_v23 = vld [vmem:[#allocation5 + $0x450] sm:$0xff]  }
  0x78   :  { %2347 = vmatprep.subr.bf16.mxu1 %v2619_v26  ;;  %v2686_v26 = vld [vmem:[#allocation5 + $0x458] sm:$0xff]  }
  0x79   :  { %2326 = vmatpush3.bf16.msra.mxu0 %v2618_v25  ;;  %v2685_v25 = vld [vmem:[#allocation5 + $0x490] sm:$0xff]  }
  0x7a   :  { %2327 = vmatprep.subr.bf16.mxu0 %v2621_v28  ;;  %v2688_v28 = vld [vmem:[#allocation5 + $0x498] sm:$0xff]  }
  0x7b   :  { %2348 = vmatpush3.bf16.msra.mxu1 %v2620_v27  ;;  %v2687_v27 = vld [vmem:[#allocation5 + $0x418] sm:$0xff]  }
  0x7c   :  { %2349 = vmatprep.subr.bf16.mxu1 %v2623_v30  ;;  %v2690_v30 = vld [vmem:[#allocation5 + $0x420] sm:$0xff]  }
  0x7d   :  { %2328 = vmatpush3.bf16.msra.mxu0 %v2622_v29  ;;  %v2689_v29 = vld [vmem:[#allocation5 + $0x460] sm:$0xff]  }
  0x7e   :  { %2329 = vmatprep.subr.bf16.mxu0 %v2625_v32  ;;  %v2692_v32 = vld [vmem:[#allocation5 + $0x468] sm:$0xff]  }
  0x7f   :  { %2350 = vmatpush3.bf16.msra.mxu1 %v2624_v31  ;;  %v2691_v31 = vld [vmem:[#allocation5 + $0x4a0] sm:$0xff]  }
  0x80   :  { %2351 = vmatprep.subr.bf16.mxu1 %v2627_v34  ;;  %v2694_v34 = vld [vmem:[#allocation5 + $0x4a8] sm:$0xff]  }
  0x81   :  { %2330 = vmatpush3.bf16.msra.mxu0 %v2626_v33  ;;  %v2693_v33 = vld [vmem:[#allocation5 + $0x428] sm:$0xff]  }
  0x82   :  { %2331 = vmatprep.subr.bf16.mxu0 %v2629_v36  ;;  %v2696_v36 = vld [vmem:[#allocation5 + $0x430] sm:$0xff]  }
  0x83   :  { %2352 = vmatpush3.bf16.msra.mxu1 %v2628_v35  ;;  %v2695_v35 = vld [vmem:[#allocation5 + $0x470] sm:$0xff]  }
  0x84   :  { %2353 = vmatprep.subr.bf16.mxu1 %v2631_v38  ;;  %v2702_v38 = vld [vmem:[#allocation2 + $0x44] ss:$76 sps:$4 sm:$0xff]  }
  0x85   :  { %2332 = vmatpush3.bf16.msra.mxu0 %v2630_v37  ;;  %v2697_v37 = vld [vmem:[#allocation5 + $0x4b0] sm:$0xff]  }
  0x86   :  { %2361 = vmatprep.subr.bf16.mxu0 %v2636_v42  ;;  %v2700_v42 = vld [vmem:[#allocation2 + $0x40] ss:$76 sps:$4 sm:$0xff]  }
  0x87   :  { %2354 = vmatpush3.bf16.msra.mxu1 %v2635_v41  ;;  %v2703_v41 = vld [vmem:[#allocation5 + $0x4b8] sm:$0xff]  }
  0x88   :  { %1584 = vmatmul.mubr.bf16.vlgmr.msra.gmra.mrb[8].mxu0 %v2632_v39  ;;  %2383 = vmatprep.subr.bf16.mxu1 %v2641_v46  ;;  %v2698_v39 = vld [vmem:[#allocation5 + $0x478] sm:$0xff]   ;;  %v375_v46 = vlaneseq }
  0x89   :  { %2362 = vmatpush3.bf16.msra.mxu0 %v2640_v45  ;;  %1665 = vmatprep.mubr.bf16.mxu0 %v2672_v12  ;;  %v2706_v45 = vld [vmem:[%s2963_s2 + $0x8] sm:$0xff]  }
  0x8a   :  { %1625 = vmatmul.mubr.bf16.vlgmr.msra.gmra.mrb[8].mxu1 %v2637_v43  ;;  %2363 = vmatprep.subr.bf16.mxu0 %v2643_v48  ;;  %v2704_v43 = vld [vmem:[#allocation2 + $0x48] ss:$76 sps:$4 sm:$0xff]   ;;  %v2884_v48 = vshrl.u32 %v375_v46, 7 }
  0x8b   :  { %2384 = vmatpush3.bf16.msra.mxu1 %v2642_v47  ;;  %1706 = vmatprep.mubr.bf16.mxu1 %v2677_v16  ;;  %v2707_v47 = vld [vmem:[%s2963_s2 + $0x10] sm:$0xff]  }
  0x8c   :  { %2385 = vmatprep.subr.bf16.mxu1 %v2645_v50  ;;  %v377_v50 = vsub.s32 0, %v2884_v48 }
  0x8d   :  { %2364 = vmatpush3.bf16.msra.mxu0 %v2644_v49  ;;  %v2708_v49 = vld [vmem:[%s2963_s2 + $0x18] sm:$0xff]  }
  0x8e   :  { %2365 = vmatprep.subr.bf16.mxu0 %v2647_v52  ;;  %v2709_v52 = vld [vmem:[%s2963_s2 + $0x20] sm:$0xff]  }
  0x8f   :  { %2386 = vmatpush3.bf16.msra.mxu1 %v2646_v51  ;;  %v2895_v51 = vld [vmem:[%s2965_s4] sm:$0x7] }
  0x90   :  { %2387 = vmatprep.subr.bf16.mxu1 %v2649_v54  ;;  %v378_v54 = vrot.slane %v2895_v51, %v377_v50 }
  0x91   :  { %2366 = vmatpush3.bf16.msra.mxu0 %v2648_v53 }
  0x92   :  { %2367 = vmatprep.subr.bf16.mxu0 %v2651_v56 }
  0x93   :  { %2388 = vmatpush3.bf16.msra.mxu1 %v2650_v55 }
  0x94   :  { %2389 = vmatprep.subr.bf16.mxu1 %v2653_v58 }
  0x95   :  { %2368 = vmatpush3.bf16.msra.mxu0 %v2652_v57 }
  0x96   :  { %2369 = vmatprep.subr.bf16.mxu0 %v2655_v60 }
  0x97   :  { %2390 = vmatpush3.bf16.msra.mxu1 %v2654_v59 }
  0x98   :  { %2391 = vmatprep.subr.bf16.mxu1 %v2657_v62 }
  0x99   :  { %2370 = vmatpush3.bf16.msra.mxu0 %v2656_v61 }
  0x9a   :  { %2371 = vmatprep.subr.bf16.mxu0 %v2659_v0 }
  0x9b   :  { %2392 = vmatpush3.bf16.msra.mxu1 %v2658_v63 }
  0x9c   :  { %2393 = vmatprep.subr.bf16.mxu1 %v2661_v2 }
  0x9d   :  { %2372 = vmatpush3.bf16.msra.mxu0 %v2660_v1 }
  0x9e   :  { %2373 = vmatprep.subr.bf16.mxu0 %v2663_v4 }
  0x9f   :  { %2394 = vmatpush3.bf16.msra.mxu1 %v2662_v3 }
  0xa0   :  { %2395 = vmatprep.subr.bf16.mxu1 %v2665_v6  ;;  %v2710_v6 = vld [vmem:[%s2963_s2 + $0x28] sm:$0xff]  }
  0xa1   :  { %2374 = vmatpush3.bf16.msra.mxu0 %v2664_v5 }
  0xa2   :  { %2375 = vmatprep.subr.bf16.mxu0 %v2667_v8  ;;  %v2712_v8 = vld [vmem:[%s2963_s2 + $0x38] sm:$0xff]  }
  0xa3   :  { %2396 = vmatpush3.bf16.msra.mxu1 %v2666_v7  ;;  %v2711_v7 = vld [vmem:[%s2963_s2 + $0x30] sm:$0xff]  }
  0xa4   :  { %2397 = vmatprep.subr.bf16.mxu1 %v2669_v10  ;;  %v2714_v10 = vld [vmem:[%s2964_s3 + $0x8] sm:$0xff]  }
  0xa5   :  { %2376 = vmatpush3.bf16.msra.mxu0 %v2668_v9  ;;  %v2713_v9 = vld [vmem:[%s2964_s3] sm:$0xff]  }
  0xa6   :  { %2405 = vmatprep.subr.bf16.mxu0 %v2674_v14 }
  0xa7   :  { %2398 = vmatpush3.bf16.msra.mxu1 %v2673_v13  ;;  %v2716_v13 = vld [vmem:[%s2964_s3 + $0x18] sm:$0xff]  }
  0xa8   :  { %1666 = vmatmul.mubr.bf16.vlgmr.msra.gmra.mrb[12].mxu0 %v2670_v11  ;;  %2454 = vmatprep.subr.bf16.mxu1 %v2799_v18  ;;  %v2715_v11 = vld [vmem:[%s2964_s3 + $0x10] sm:$0xff]  }
  0xa9   :  { %2406 = vmatpush3.bf16.msra.mxu0 %v2678_v17  ;;  %1747 = vmatprep.mubr.bf16.mxu0 %v2702_v38 }
  0xaa   :  { %1707 = vmatmul.mubr.bf16.vlgmr.msra.gmra.mrb[12].mxu1 %v2675_v15  ;;  %2407 = vmatprep.subr.bf16.mxu0 %v2680_v20 }
  0xab   :  { %2455 = vmatpush3.bf16.msra.mxu1 %v2679_v19  ;;  %2470 = vmatprep.mubr.msk.bf16.mxu1 %vm2800_vm0, %v2799_v18 }
  0xac   :  { %2456 = vmatprep.subr.bf16.mxu1 %v2799_v18 }
  0xad   :  { %2408 = vmatpush3.bf16.msra.mxu0 %v2681_v21 }
  0xae   :  { %2409 = vmatprep.subr.bf16.mxu0 %v2683_v23 }
  0xaf   :  { %2457 = vmatpush3.bf16.msra.mxu1 %v2682_v22  ;;  %v2717_v22 = vld [vmem:[%s2964_s3 + $0x20] sm:$0xff]  }
  0xb0   :  { %2458 = vmatprep.subr.bf16.mxu1 %v2799_v18 }
  0xb1   :  { %2410 = vmatpush3.bf16.msra.mxu0 %v2684_v24 }
  0xb2   :  { %2411 = vmatprep.subr.bf16.mxu0 %v2686_v26 }
  0xb3   :  { %2459 = vmatpush3.bf16.msra.mxu1 %v2685_v25 }
  0xb4   :  { %2460 = vmatprep.subr.bf16.mxu1 %v2799_v18 }
  0xb5   :  { %2412 = vmatpush3.bf16.msra.mxu0 %v2687_v27 }
  0xb6   :  { %2413 = vmatprep.subr.bf16.mxu0 %v2689_v29 }
  0xb7   :  { %2461 = vmatpush3.bf16.msra.mxu1 %v2688_v28 }
  0xb8   :  { %2462 = vmatprep.subr.bf16.mxu1 %v2799_v18 }
  0xb9   :  { %2414 = vmatpush3.bf16.msra.mxu0 %v2690_v30  ;;  %v2718_v30 = vld [vmem:[%s2964_s3 + $0x28] sm:$0xff]  }
  0xba   :  { %2415 = vmatprep.subr.bf16.mxu0 %v2692_v32 }
  0xbb   :  { %2463 = vmatpush3.bf16.msra.mxu1 %v2691_v31 }
  0xbc   :  { %2464 = vmatprep.subr.bf16.mxu1 %v2799_v18 }
  0xbd   :  { %2416 = vmatpush3.bf16.msra.mxu0 %v2693_v33 }
  0xbe   :  { %2417 = vmatprep.subr.bf16.mxu0 %v2695_v35 }
  0xbf   :  { %2465 = vmatpush3.bf16.msra.mxu1 %v2694_v34 }
  0xc0   :  { %2466 = vmatprep.subr.bf16.mxu1 %v2799_v18 }
  0xc1   :  { %2418 = vmatpush3.bf16.msra.mxu0 %v2696_v36 }
  0xc2   :  { %2419 = vmatprep.subr.bf16.mxu0 %v2698_v39 }
  0xc3   :  { %2467 = vmatpush3.bf16.msra.mxu1 %v2697_v37 }
  0xc4   :  { %2468 = vmatprep.subr.bf16.mxu1 %v2799_v18 }
  0xc5   :  { %2420 = vmatpush3.bf16.msra.mxu0 %v2699_v40 }
  0xc6   :  { %2474 = vmatprep.subr.bf16.mxu0 %v2799_v18 }
  0xc7   :  { %2469 = vmatpush3.bf16.msra.mxu1 %v2703_v41 }
  0xc8   :  { %2494 = vmatprep.subr.bf16.mxu1 %v2799_v18  ;;  %1748 = vmatmul.mubr.bf16.vlgmr.msra.gmra.mrb[16].mxu0 %v2700_v42 }
  0xc9   :  { %2490 = vmatprep.mubr.msk.bf16.mxu0 %vm2800_vm0, %v2799_v18  ;;  %2475 = vmatpush3.bf16.msra.mxu0 %v2705_v44 }
  0xca   :  { %2471 = vmatmul.mubr.bf16.vlgmr.msra.gmra.mrb[16].mxu1 %v2704_v43  ;;  %2476 = vmatprep.subr.bf16.mxu0 %v2799_v18 }
  0xcb   :  { %2510 = vmatprep.mubr.msk.bf16.mxu1 %vm2800_vm0, %v2799_v18  ;;  %2495 = vmatpush3.bf16.msra.mxu1 %v2713_v9 }
  0xcc   :  { %2496 = vmatprep.subr.bf16.mxu1 %v2799_v18 }
  0xcd   :  { %2477 = vmatpush3.bf16.msra.mxu0 %v2706_v45 }
  0xce   :  { %2478 = vmatprep.subr.bf16.mxu0 %v2799_v18 }
  0xcf   :  { %2497 = vmatpush3.bf16.msra.mxu1 %v2714_v10 }
  0xd0   :  { %2498 = vmatprep.subr.bf16.mxu1 %v2799_v18 }
  0xd1   :  { %2479 = vmatpush3.bf16.msra.mxu0 %v2707_v47 }
  0xd2   :  { %2480 = vmatprep.subr.bf16.mxu0 %v2799_v18 }
  0xd3   :  { %2499 = vmatpush3.bf16.msra.mxu1 %v2715_v11 }
  0xd4   :  { %2500 = vmatprep.subr.bf16.mxu1 %v2799_v18 }
  0xd5   :  { %2481 = vmatpush3.bf16.msra.mxu0 %v2708_v49 }
  0xd6   :  { %2482 = vmatprep.subr.bf16.mxu0 %v2799_v18 }
  0xd7   :  { %2501 = vmatpush3.bf16.msra.mxu1 %v2716_v13 }
  0xd8   :  { %2502 = vmatprep.subr.bf16.mxu1 %v2799_v18 }
  0xd9   :  { %2483 = vmatpush3.bf16.msra.mxu0 %v2709_v52 }
  0xda   :  { %2484 = vmatprep.subr.bf16.mxu0 %v2799_v18 }
  0xdb   :  { %2503 = vmatpush3.bf16.msra.mxu1 %v2717_v22  ;;  %v1818_v22 = vsub.s32 1, %v2884_v48 }
  0xdc   :  { %2504 = vmatprep.subr.bf16.mxu1 %v2799_v18 }
  0xdd   :  { %2485 = vmatpush3.bf16.msra.mxu0 %v2710_v6 }
  0xde   :  { %2486 = vmatprep.subr.bf16.mxu0 %v2799_v18 }
  0xdf   :  { %2505 = vmatpush3.bf16.msra.mxu1 %v2718_v30 }
  0xe0   :  { %2506 = vmatprep.subr.bf16.mxu1 %v2799_v18 }
  0xe1   :  { %2487 = vmatpush3.bf16.msra.mxu0 %v2711_v7 }
  0xe2   :  { %2488 = vmatprep.subr.bf16.mxu0 %v2799_v18 }
  0xe5   :  { %2489 = vmatpush3.bf16.msra.mxu0 %v2712_v8 }
 0x11b   :  { %v2245_v53 = vpop.f32.mrb[0].mxu0 }
 0x11c   :  { %v2246_v55 = vpop.f32.mrb[1].mxu0 }
 0x11d   :  { %v2247_v56 = vadd.f32 %v2246_v55, %v2245_v53  ;;  %v2248_v57 = vpop.f32.mrb[2].mxu0  ;;  %v2267_v58 = vpop.f32.mrb[0].mxu1 }
 0x11e   :  { %v2249_v59 = vpop.f32.mrb[3].mxu0  ;;  %v2268_v62 = vpop.f32.mrb[1].mxu1 }
 0x11f   :  { %v1422_v60 = vadd.f32 %v2247_v56, %v378_v54  ;;  %v2250_v61 = vadd.f32 %v2249_v59, %v2248_v57  ;;  %v2269_v63 = vadd.f32 %v2268_v62, %v2267_v58  ;;  %v2270_v0 = vpop.f32.mrb[2].mxu1 }
 0x120   :  { %v2271_v2 = vpop.f32.mrb[3].mxu1 }
 0x121   :  { %v1425_v1 = vadd.f32 %v2250_v61, %v378_v54  ;;  %v1463_v3 = vadd.f32 %v2269_v63, %v1422_v60  ;;  %v2272_v4 = vadd.f32 %v2271_v2, %v2270_v0 }
 0x123   :  { %v1466_v5 = vadd.f32 %v2272_v4, %v1425_v1 }
 0x13b   :  { %v2289_v12 = vpop.f32.mrb[4].mxu0 }
 0x13c   :  { %v2290_v14 = vpop.f32.mrb[5].mxu0 }
 0x13d   :  { %v2291_v15 = vadd.f32 %v2290_v14, %v2289_v12  ;;  %v2292_v16 = vpop.f32.mrb[6].mxu0  ;;  %v2311_v20 = vpop.f32.mrb[4].mxu1 }
 0x13e   :  { %v2293_v17 = vpop.f32.mrb[7].mxu0  ;;  %v2312_v23 = vpop.f32.mrb[5].mxu1 }
 0x13f   :  { %v1504_v19 = vadd.f32 %v2291_v15, %v1463_v3  ;;  %v2294_v21 = vadd.f32 %v2293_v17, %v2292_v16  ;;  %v2313_v25 = vadd.f32 %v2312_v23, %v2311_v20  ;;  %v2314_v26 = vpop.f32.mrb[6].mxu1  ;;  %v2719_v20 = vld [vmem:[%s2964_s3 + $0x30] sm:$0xff]   ;;  %v1819_v23 = vrot.slane %v2895_v51, %v1818_v22 }
 0x140   :  { %v2315_v27 = vpop.f32.mrb[7].mxu1  ;;  %2507 = vmatpush3.bf16.msra.mxu1 %v2719_v20 }
 0x141   :  { %v1507_v24 = vadd.f32 %v2294_v21, %v1466_v5  ;;  %v1545_v28 = vadd.f32 %v2313_v25, %v1504_v19  ;;  %v2316_v29 = vadd.f32 %v2315_v27, %v2314_v26  ;;  %2508 = vmatprep.subr.bf16.mxu1 %v2799_v18  ;;  %v2720_v21 = vld [vmem:[%s2964_s3 + $0x38] sm:$0xff]   ;;  %v1930_v18 = vsub.s32 2, %v2884_v48  ;;  %s2801_s3 = smov [#allocation7]  }
 0x142   :  { %s2029_s24 = sshll.u32 %s2801_s3, 4  ;;  %s2030_s24 = int_to_ptr.vmem [resolvable:$true] %s2029_s24 }
 0x143   :  { %v1548_v31 = vadd.f32 %v2316_v29, %v1507_v24  ;;  %s2765_s25 = scalar_lea.vmem %s2030_s24, 256  ;;  %p2770_p3 = scmp.lt.s32.totalorder %s2030_s24, %s2030_s24 }
 0x144   :  { %2509 = vmatpush3.bf16.msra.mxu1 %v2720_v21  ;;  %p2766_p2 = scmp.ne.s32.totalorder %s2030_s24, %s2765_s25  ;;  %p2771_p4 = scmp.lt.s32.totalorder %s2765_s25, %s2765_s25 }
 0x146   :  { %p2772_p5 = por %p2771_p4, %p2770_p3 }
 0x148   :  { %p2773_p6 = pnand %p2772_p5, %p2766_p2 }
 0x15b   :  { %v2333_v32 = vpop.f32.mrb[8].mxu0 }
 0x15c   :  { %v2334_v33 = vpop.f32.mrb[9].mxu0 }
 0x15d   :  { %v2335_v34 = vadd.f32 %v2334_v33, %v2333_v32  ;;  %v2336_v35 = vpop.f32.mrb[10].mxu0  ;;  %v2355_v36 = vpop.f32.mrb[8].mxu1  ;;  %v1931_v33 = vrot.slane %v2895_v51, %v1930_v18 }
 0x15e   :  { %v2337_v37 = vpop.f32.mrb[11].mxu0  ;;  %v2356_v40 = vpop.f32.mrb[9].mxu1 }
 0x15f   :  { %v1586_v38 = vadd.f32 %v2335_v34, %v1545_v28  ;;  %v2338_v39 = vadd.f32 %v2337_v37, %v2336_v35  ;;  %v2357_v41 = vadd.f32 %v2356_v40, %v2355_v36  ;;  %v2358_v42 = vpop.f32.mrb[10].mxu1 }
 0x160   :  { %v2359_v44 = vpop.f32.mrb[11].mxu1 }
 0x161   :  { %v1589_v43 = vadd.f32 %v2338_v39, %v1548_v31  ;;  %v1627_v45 = vadd.f32 %v2357_v41, %v1586_v38  ;;  %v2360_v46 = vadd.f32 %v2359_v44, %v2358_v42 }
 0x163   :  { %v1630_v47 = vadd.f32 %v2360_v46, %v1589_v43 }
 0x17b   :  { %v2377_v49 = vpop.f32.mrb[12].mxu0 }
 0x17c   :  { %v2378_v50 = vpop.f32.mrb[13].mxu0 }
 0x17d   :  { %v2379_v52 = vadd.f32 %v2378_v50, %v2377_v49  ;;  %v2380_v53 = vpop.f32.mrb[14].mxu0  ;;  %v2399_v54 = vpop.f32.mrb[12].mxu1 }
 0x17e   :  { %v2381_v55 = vpop.f32.mrb[15].mxu0  ;;  %v2400_v58 = vpop.f32.mrb[13].mxu1 }
 0x17f   :  { %v1668_v56 = vadd.f32 %v2379_v52, %v1627_v45  ;;  %v2382_v57 = vadd.f32 %v2381_v55, %v2380_v53  ;;  %v2401_v59 = vadd.f32 %v2400_v58, %v2399_v54  ;;  %v2402_v60 = vpop.f32.mrb[14].mxu1 }
 0x180   :  { %v2403_v62 = vpop.f32.mrb[15].mxu1 }
 0x181   :  { %v1671_v61 = vadd.f32 %v2382_v57, %v1630_v47  ;;  %v1709_v63 = vadd.f32 %v2401_v59, %v1668_v56  ;;  %v2404_v0 = vadd.f32 %v2403_v62, %v2402_v60 }
 0x183   :  { %v1712_v1 = vadd.f32 %v2404_v0, %v1671_v61 }
 0x19b   :  { %v2421_v2 = vpop.f32.mrb[16].mxu0 }
 0x19c   :  { %v2422_v3 = vpop.f32.mrb[17].mxu0 }
 0x19d   :  { %v1790_v4 = vpop.f32.mrb[16].mxu1  ;;  %v2423_v5 = vadd.f32 %v2422_v3, %v2421_v2  ;;  %v2424_v6 = vpop.f32.mrb[18].mxu0 }
 0x19e   :  { %v2472_v7 = vpop.f32.mrb[17].mxu1  ;;  %v2425_v8 = vpop.f32.mrb[19].mxu0 }
 0x19f   :  { %v1793_v9 = vpop.f32.mrb[18].mxu1  ;;  %v1750_v10 = vadd.f32 %v2423_v5, %v1709_v63  ;;  %v2426_v11 = vadd.f32 %v2425_v8, %v2424_v6 }
 0x1a0   :  { %v2473_v12 = vpop.f32.mrb[19].mxu1 }
 0x1a1   :  { %v1791_v13 = vadd.f32 %v1790_v4, %v1750_v10  ;;  %v1753_v14 = vadd.f32 %v2426_v11, %v1712_v1 }
 0x1a3   :  { %v1794_v15 = vadd.f32 %v1793_v9, %v1753_v14  ;;  %v1797_v16 = vmax.f32 %v1791_v13, 0.0 }
 0x1a5   :  { %v1798_v17 = vmax.f32 %v1794_v15, 0.0 }
 0x1a7   :  { %v1799_v19 = vpack.c.bf16 %v1798_v17, %v1797_v16 }
 0x1a9   :  { %2491 = vmatmul.mubr.bf16.vlgmr.msra.gmra.mrb[20].mxu0 %v1799_v19 }
 0x27c   :  { %v1902_v24 = vpop.f32.mrb[20].mxu0 }
 0x27d   :  { %v1903_v25 = vadd.f32 %v1902_v24, %v1819_v23  ;;  %v2492_v26 = vpop.f32.mrb[21].mxu0 }
 0x27e   :  { %v1905_v27 = vpop.f32.mrb[22].mxu0 }
 0x27f   :  { %v1906_v28 = vadd.f32 %v1905_v27, %v1819_v23  ;;  %v2493_v29 = vpop.f32.mrb[23].mxu0  ;;  %v1909_v30 = vmax.f32 %v1903_v25, 0.0 }
 0x281   :  { %v1910_v31 = vmax.f32 %v1906_v28, 0.0 }
 0x283   :  { %v1911_v32 = vpack.c.bf16 %v1910_v31, %v1909_v30 }
 0x285   :  { %2511 = vmatmul.mubr.bf16.vlgmr.msra.gmra.mrb[20].mxu1 %v1911_v32 }
 0x358   :  { %v2014_v34 = vpop.f32.mrb[20].mxu1 }
 0x359   :  { %v2015_v35 = vadd.f32 %v2014_v34, %v1931_v33  ;;  %v2512_v36 = vpop.f32.mrb[21].mxu1 }
 0x35a   :  { %v2017_v37 = vpop.f32.mrb[22].mxu1 }
 0x35b   :  { %2022 = vst.msk [vmem:[#allocation7] sm:$0xff] %vm2021_vm1, %v2015_v35  ;;  %v2018_v38 = vadd.f32 %v2017_v37, %v1931_v33  ;;  %v2513_v39 = vpop.f32.mrb[23].mxu1 }
 0x35d   :  { %2023 = vst.msk [vmem:[#allocation7 + $0x8] sm:$0xff] %vm2021_vm1, %v2018_v38 }
 0x35e   :  { %2776 = shalt.err (!%p2773_p6)
}
 0x35f   :  { %s2777_s28 = scalar_lea.hbm %s2966_s5, 256 }
 0x360   :  { %p2778_p7 = scmp.ne.s32.totalorder %s2966_s5, %s2777_s28  ;;  %p2781_p8 = scmp.lt.u32.totalorder %s2777_s28, %s2966_s5 }
 0x362   :  { %p2783_p9 = pnand %p2781_p8, %p2778_p7 }
 0x364   :  { %2786 = shalt.err (!%p2783_p9)
}
 0x365   :  { %s2802_s7 = smov 128   ;;  %s2803_s8 = smov 8  }
 0x366   :  { %2035 = dma.vmem_to_hbm [thread:$0]  %s2030_s24, 256, %s2966_s5, [#allocation4], %s2802_s7, %s2802_s7, %s2803_s8  }
 0x367   :  { %2791 = dma.done.wait [#allocation4], 256  }
 0x368   :  { %2792 = vsyncadd [#allocation4], 4294967040 }
 0x369   :  { %2039 = vsyncpa [#allocation3], 1 }
 0x36a   :  { %2040 = vsyncpa [#allocation6], 1 }
 0x36b   :  { %2041 = vsyncpa [#allocation4], 1 }

</bundles_post_ra>
